<compile_context>
chip_gen: v5e
topology: v5e:2x2
jax: 0.10.0
libtpu: 0.0.40
codegen_flags: <defaults>
</compile_context>

<pallas_src>
import jax
import jax.numpy as jnp
from jax.experimental import pallas as pl
from jax.experimental.pallas import tpu as pltpu

LANE = 128
SUBLANE = 8


def _round_up(x, m):
    return (x + m - 1) // m * m


def _vmem_budget_bytes():
    """~85% of per-core VMEM (v5e/v6e 128 MiB, v7x 64 MiB/TC); safe fallback."""
    try:
        cap = int(pltpu.get_tpu_info().vmem_capacity_bytes)
    except Exception:
        cap = 64 * 1024 * 1024
    return int(0.85 * cap)


def _resident_spec(block_shape):
    """Constant-index operand: single-buffer it (double-buffering buys nothing)."""
    nd = len(block_shape)
    index_map = lambda i: (0,) * nd
    try:
        return pl.BlockSpec(block_shape, index_map, pipeline_mode=pl.Buffered(1))
    except Exception:  # older jax without pipeline_mode / Buffered
        return pl.BlockSpec(block_shape, index_map)


def _pick_row_tile(n_pad, y1_width, c_pad, vmem_budget):
    """Largest row tile (with >= 2 grid steps for megacore) whose worst-stage
    VMEM footprint fits the per-core budget."""
    def footprint(tm):
        a_tile = 2 * tm * n_pad * 1              # int8 A rows, double-buffered
        dinv_tile = 2 * tm * LANE * 4            # (tm,1) f32 pads to 128 lanes
        out_tile = 2 * tm * c_pad * 4
        res1 = n_pad * y1_width * 2 + (1 << 20)  # resident bf16 Y + small weights
        res2 = n_pad * c_pad * 4 + (1 << 20)     # resident f32 y2
        return a_tile + dinv_tile + out_tile + max(res1, res2)

    cands = [t for t in (2048, 1024, 512, 256, 128, 64, 32, 16, 8)
             if t < n_pad and n_pad % t == 0]
    if not cands:
        cands = [SUBLANE]
    fitting = [t for t in cands if footprint(t) <= vmem_budget]
    return fitting[0] if fitting else cands[-1]


# ---------------------------------------------------------------------------
# Kernels
# ---------------------------------------------------------------------------

def _stage1_post_w1(a_ref, y_ref, dinv_ref, w1_ref, b1_ref, w2_ref, y2_ref):
    """F <= H path: aggregate raw (dinv*X) first (K=F), apply W1 after.

    h  = relu(dinv * (A @ (dinv*X)) @ W1 + b1)        (this row block)
    y2 = (dinv * h) @ W2                              (layer-2 feature transform)
    """
    a = a_ref[...].astype(jnp.bfloat16)              # int8 counts -> exact bf16
    agg = jnp.dot(a, y_ref[...], preferred_element_type=jnp.float32)
    h = jnp.dot(dinv_ref[...] * agg, w1_ref[...],
                preferred_element_type=jnp.float32)
    h = jnp.maximum(h + b1_ref[...], 0.0)
    y2_ref[...] = jnp.dot(dinv_ref[...] * h, w2_ref[...],
                          preferred_element_type=jnp.float32).astype(y2_ref.dtype)


def _stage1_pre_w1(a_ref, y_ref, dinv_ref, b1_ref, w2_ref, y2_ref):
    """F > H path: y_ref already holds dinv * (X @ W1) (K=H aggregation)."""
    a = a_ref[...].astype(jnp.bfloat16)
    agg = jnp.dot(a, y_ref[...], preferred_element_type=jnp.float32)
    h = jnp.maximum(dinv_ref[...] * agg + b1_ref[...], 0.0)
    y2_ref[...] = jnp.dot(dinv_ref[...] * h, w2_ref[...],
                          preferred_element_type=jnp.float32).astype(y2_ref.dtype)


def _stage2_kernel(a_ref, y2_ref, dinv_ref, b2_ref, out_ref):
    """out = dinv * (A @ y2) + b2 with lane-dense (c_pad=128) stores.

    y2 arrives in f32; a bf16 hi/lo split keeps the big matmul on the bf16 MXU
    path while preserving ~f32 precision (avoids double bf16 rounding across
    the stage boundary flagged in review)."""
    a = a_ref[...].astype(jnp.bfloat16)
    y2 = y2_ref[...]
    y2_hi = y2.astype(jnp.bfloat16)
    y2_lo = (y2 - y2_hi.astype(jnp.float32)).astype(jnp.bfloat16)
    agg = (jnp.dot(a, y2_hi, preferred_element_type=jnp.float32)
           + jnp.dot(a, y2_lo, preferred_element_type=jnp.float32))
    out_ref[...] = (dinv_ref[...] * agg + b2_ref[...]).astype(out_ref.dtype)


# ---------------------------------------------------------------------------
# Wrapper / glue
# ---------------------------------------------------------------------------

def prepare_graph(edge_index, num_nodes):
    """One-time graph prep, hoisted out of the jitted forward.

    Returns the lane-padded dense A+I as int8 (exact small counts) and the
    padded deg^-1/2 column vector.  The symmetric D^-1/2 (.) D^-1/2 scaling is
    applied inside the kernels as cheap VPU row scales."""
    src, dst = edge_index[0], edge_index[1]
    a = jnp.zeros((num_nodes, num_nodes), jnp.float32)
    a = a.at[dst, src].add(1.0)                        # A[target, source] = 1
    a = a + jnp.eye(num_nodes, dtype=jnp.float32)      # self-loops
    deg = a.sum(axis=1)
    dinv = jnp.where(deg > 0, jax.lax.rsqrt(deg), 0.0)

    n_pad = _round_up(max(num_nodes, LANE), LANE)
    a_p = jnp.zeros((n_pad, n_pad), jnp.int8).at[:num_nodes, :num_nodes].set(
        a.astype(jnp.int8))
    dinv_p = jnp.zeros((n_pad, 1), jnp.float32).at[:num_nodes, 0].set(dinv)
    return a_p, dinv_p


def gnn_forward(x, a_p, dinv_p, params):
    """Two pallas_calls: stage 1 (hop-1 + W1 + ReLU + W2 feature transform),
    stage 2 (hop-2 aggregation + bias)."""
    w1, b1, w2, b2 = params
    n, f = x.shape
    hidden = w1.shape[1]
    num_classes = w2.shape[1]
    n_pad = a_p.shape[0]
    c_pad = _round_up(num_classes, LANE)       # lane-dense output stores

    dinv = dinv_p[:n, 0]

    # Lane-pad the tiny layer-2 weights once per call (negligible).
    w2_p = jnp.zeros((hidden, c_pad), jnp.float32).at[:, :num_classes].set(w2)
    b2_p = jnp.zeros((1, c_pad), jnp.float32).at[:, :num_classes].set(b2)

    # Explicit matmul ordering: make the N^2 aggregation's K = min(F, H).
    if f <= hidden:
        y_in = jnp.zeros((n_pad, f), jnp.bfloat16).at[:n, :].set(
            (dinv[:, None] * x).astype(jnp.bfloat16))
        stage1 = _stage1_post_w1
        extra_args = (w1,)
        extra_specs = [_resident_spec((f, hidden))]
    else:
        xw = (dinv[:, None] * (x @ w1)).astype(jnp.bfloat16)
        y_in = jnp.zeros((n_pad, hidden), jnp.bfloat16).at[:n, :].set(xw)
        stage1 = _stage1_pre_w1
        extra_args = ()
        extra_specs = []

    budget = _vmem_budget_bytes()
    tm = _pick_row_tile(n_pad, y_in.shape[1], c_pad, budget)
    grid = (n_pad // tm,)

    cparams = pltpu.CompilerParams(
        dimension_semantics=("parallel",),     # split row blocks across TCs (v7x)
        vmem_limit_bytes=budget)

    a_row = pl.BlockSpec((tm, n_pad), lambda i: (i, 0))
    dinv_row = pl.BlockSpec((tm, 1), lambda i: (i, 0))
    out_row = pl.BlockSpec((tm, c_pad), lambda i: (i, 0))

    # Stage 1: layer-1 aggregation + W1 + bias + ReLU + layer-2 feature transform.
    y2 = pl.pallas_call(
        stage1,
        out_shape=jax.ShapeDtypeStruct((n_pad, c_pad), jnp.float32),
        grid=grid,
        in_specs=[
            a_row,                                      # int8 A row tile
            _resident_spec((n_pad, y_in.shape[1])),     # resident Y (bf16)
            dinv_row,                                   # dinv rows
            *extra_specs,                               # W1 (F<=H path only)
            _resident_spec((1, hidden)),                # b1
            _resident_spec((hidden, c_pad)),            # W2 (lane-padded)
        ],
        out_specs=out_row,
        compiler_params=cparams,
    )(a_p, y_in, dinv_p, *extra_args, b1, w2_p)

    # Stage 2: layer-2 aggregation hop over the narrow f32 y2 matrix.
    out_p = pl.pallas_call(
        _stage2_kernel,
        out_shape=jax.ShapeDtypeStruct((n_pad, c_pad), jnp.float32),
        grid=grid,
        in_specs=[
            a_row,                                      # int8 A row tile
            _resident_spec((n_pad, c_pad)),             # resident y2 (f32)
            dinv_row,
            _resident_spec((1, c_pad)),                 # b2 (lane-padded)
        ],
        out_specs=out_row,
        compiler_params=cparams,
    )(a_p, y2, dinv_p, b2_p)

    return out_p[:n, :num_classes]


def init_params(key, num_features, hidden, num_classes):
    k1, k2 = jax.random.split(key, 2)
    lim1 = (6.0 / (num_features + hidden)) ** 0.5
    lim2 = (6.0 / (hidden + num_classes)) ** 0.5
    w1 = jax.random.uniform(k1, (num_features, hidden), jnp.float32, -lim1, lim1)
    b1 = jnp.zeros((1, hidden), jnp.float32)
    w2 = jax.random.uniform(k2, (hidden, num_classes), jnp.float32, -lim2, lim2)
    b2 = jnp.zeros((1, num_classes), jnp.float32)
    return w1, b1, w2, b2


def reference_forward(x, edge_index, params):
    """Pure-JAX f32 reference with identical semantics (PyG GCNConv gcn_norm)."""
    n = x.shape[0]
    src, dst = edge_index[0], edge_index[1]
    a = jnp.zeros((n, n), jnp.float32).at[dst, src].add(1.0) + jnp.eye(n)
    deg = a.sum(axis=1)
    dinv = jnp.where(deg > 0, jax.lax.rsqrt(deg), 0.0)
    a_hat = dinv[:, None] * a * dinv[None, :]
    w1, b1, w2, b2 = params
    h = jnp.maximum(a_hat @ (x @ w1) + b1, 0.0)
    return a_hat @ (h @ w2) + b2


if __name__ == "__main__":
    NUM_NODES = 16
    NUM_FEATURES = 8
    HIDDEN = 16
    NUM_CLASSES = 4

    key = jax.random.PRNGKey(0)
    kx, kp = jax.random.split(key)

    # Node features [N, F]
    x = jax.random.normal(kx, (NUM_NODES, NUM_FEATURES), jnp.float32)

    # Deterministic graph: bidirectional ring (2*N directed edges), edge_index [2, E]
    idx = jnp.arange(NUM_NODES, dtype=jnp.int32)
    src = jnp.concatenate([idx, (idx + 1) % NUM_NODES])
    dst = jnp.concatenate([(idx + 1) % NUM_NODES, idx])
    edge_index = jnp.stack([src, dst], axis=0)  # [2, 32]

    params = init_params(kp, NUM_FEATURES, HIDDEN, NUM_CLASSES)

    # Graph prep (padded int8 A+I and dinv) is done ONCE, outside the jitted path.
    a_p, dinv_p = prepare_graph(edge_index, NUM_NODES)
    a_p, dinv_p = jax.block_until_ready((a_p, dinv_p))

    forward = jax.jit(gnn_forward)
    out = jax.block_until_ready(forward(x, a_p, dinv_p, params))

    ref = reference_forward(x, edge_index, params)
    assert out.shape == (NUM_NODES, NUM_CLASSES)
    # bf16 aggregation inputs with f32 accumulation => slightly looser tolerance
    # than the pure-f32 reference.
    assert jnp.allclose(out, ref, atol=2e-2, rtol=2e-2), (
        float(jnp.max(jnp.abs(out - ref))))

    print("KERNEL_OK")
</pallas_src>

<mosaic_0001>
module attributes {stable_mosaic.version = 11 : i64} {
  func.func @_stage2_kernel(%arg0: i32, %arg1: memref<64x128xi8, #tpu.memory_space<vmem>>, %arg2: memref<128x128xf32, #tpu.memory_space<vmem>>, %arg3: memref<64x1xf32, #tpu.memory_space<vmem>>, %arg4: memref<1x128xf32, #tpu.memory_space<vmem>>, %arg5: memref<64x128xf32, #tpu.memory_space<vmem>>) attributes {dimension_semantics = [#tpu.dimension_semantics<parallel>], iteration_bounds = array<i64: 2>, scalar_prefetch = 0 : i64, scratch_operands = 0 : i64, tpu.core_type = #tpu.core_type<tc>, window_params = [{transform_indices = @transform_0, window_bounds = array<i64: 64, 128>}, {pipeline_mode = #tpu.pipeline_mode<synchronous>, transform_indices = @transform_1, window_bounds = array<i64: 128, 128>}, {transform_indices = @transform_2, window_bounds = array<i64: 64, 1>}, {pipeline_mode = #tpu.pipeline_mode<synchronous>, transform_indices = @transform_3, window_bounds = array<i64: 1, 128>}, {transform_indices = @transform_4, window_bounds = array<i64: 64, 128>}]} {
    %c0 = arith.constant 0 : index
    %c0_0 = arith.constant 0 : index
    %0 = vector.load %arg1[%c0, %c0_0] : memref<64x128xi8, #tpu.memory_space<vmem>>, vector<64x128xi8>
    %1 = arith.sitofp %0 : vector<64x128xi8> to vector<64x128xbf16>
    %c0_1 = arith.constant 0 : index
    %c0_2 = arith.constant 0 : index
    %2 = vector.load %arg2[%c0_1, %c0_2] : memref<128x128xf32, #tpu.memory_space<vmem>>, vector<128x128xf32>
    %3 = arith.truncf %2 : vector<128x128xf32> to vector<128x128xbf16>
    %4 = arith.extf %3 : vector<128x128xbf16> to vector<128x128xf32>
    %5 = arith.subf %2, %4 : vector<128x128xf32>
    %6 = arith.truncf %5 : vector<128x128xf32> to vector<128x128xbf16>
    %cst = arith.constant dense<0.000000e+00> : vector<64x128xf32>
    %7 = tpu.matmul %1, %3, %cst {dimension_numbers = #tpu.dot_dimension_numbers<[1], [0], [0], [1], [0, 0, 1, 1], [], []>} : vector<64x128xbf16>, vector<128x128xbf16>, vector<64x128xf32> -> vector<64x128xf32>
    %cst_3 = arith.constant dense<0.000000e+00> : vector<64x128xf32>
    %8 = tpu.matmul %1, %6, %cst_3 {dimension_numbers = #tpu.dot_dimension_numbers<[1], [0], [0], [1], [0, 0, 1, 1], [], []>} : vector<64x128xbf16>, vector<128x128xbf16>, vector<64x128xf32> -> vector<64x128xf32>
    %9 = arith.addf %7, %8 : vector<64x128xf32>
    %c0_4 = arith.constant 0 : index
    %c0_5 = arith.constant 0 : index
    %10 = vector.load %arg3[%c0_4, %c0_5] : memref<64x1xf32, #tpu.memory_space<vmem>>, vector<64x1xf32>
    %11 = vector.broadcast %10 : vector<64x1xf32> to vector<64x128xf32>
    %12 = arith.mulf %11, %9 : vector<64x128xf32>
    %c0_6 = arith.constant 0 : index
    %c0_7 = arith.constant 0 : index
    %13 = vector.load %arg4[%c0_6, %c0_7] : memref<1x128xf32, #tpu.memory_space<vmem>>, vector<1x128xf32>
    %14 = vector.broadcast %13 : vector<1x128xf32> to vector<64x128xf32>
    %15 = arith.addf %12, %14 : vector<64x128xf32>
    %c0_8 = arith.constant 0 : index
    %c0_9 = arith.constant 0 : index
    %16 = vector.load %arg5[%c0_8, %c0_9] : memref<64x128xf32, #tpu.memory_space<vmem>>, vector<64x128xf32>
    tpu.vector_store %arg5[%c0_8, %c0_9], %15 {strides = array<i32>} : memref<64x128xf32, #tpu.memory_space<vmem>>, vector<64x128xf32>,
    return
  }
  func.func @transform_0(%arg0: i32) -> (i32, i32) {
    %c0_i32 = arith.constant 0 : i32
    %c0_i32_0 = arith.constant 0 : i32
    return %arg0, %c0_i32 : i32, i32
  }
  func.func @transform_1(%arg0: i32) -> (i32, i32) {
    %c0_i32 = arith.constant 0 : i32
    %c0_i32_0 = arith.constant 0 : i32
    %c0_i32_1 = arith.constant 0 : i32
    return %c0_i32, %c0_i32_0 : i32, i32
  }
  func.func @transform_2(%arg0: i32) -> (i32, i32) {
    %c0_i32 = arith.constant 0 : i32
    %c0_i32_0 = arith.constant 0 : i32
    return %arg0, %c0_i32 : i32, i32
  }
  func.func @transform_3(%arg0: i32) -> (i32, i32) {
    %c0_i32 = arith.constant 0 : i32
    %c0_i32_0 = arith.constant 0 : i32
    %c0_i32_1 = arith.constant 0 : i32
    return %c0_i32, %c0_i32_0 : i32, i32
  }
  func.func @transform_4(%arg0: i32) -> (i32, i32) {
    %c0_i32 = arith.constant 0 : i32
    %c0_i32_0 = arith.constant 0 : i32
    return %arg0, %c0_i32 : i32, i32
  }
}

module attributes {stable_mosaic.version = 11 : i64} {
  func.func @_stage1_post_w1(%arg0: i32, %arg1: memref<64x128xi8, #tpu.memory_space<vmem>>, %arg2: memref<128x8xbf16, #tpu.memory_space<vmem>>, %arg3: memref<64x1xf32, #tpu.memory_space<vmem>>, %arg4: memref<8x16xf32, #tpu.memory_space<vmem>>, %arg5: memref<1x16xf32, #tpu.memory_space<vmem>>, %arg6: memref<16x128xf32, #tpu.memory_space<vmem>>, %arg7: memref<64x128xf32, #tpu.memory_space<vmem>>) attributes {dimension_semantics = [#tpu.dimension_semantics<parallel>], iteration_bounds = array<i64: 2>, scalar_prefetch = 0 : i64, scratch_operands = 0 : i64, tpu.core_type = #tpu.core_type<tc>, window_params = [{transform_indices = @transform_0, window_bounds = array<i64: 64, 128>}, {pipeline_mode = #tpu.pipeline_mode<synchronous>, transform_indices = @transform_1, window_bounds = array<i64: 128, 8>}, {transform_indices = @transform_2, window_bounds = array<i64: 64, 1>}, {pipeline_mode = #tpu.pipeline_mode<synchronous>, transform_indices = @transform_3, window_bounds = array<i64: 8, 16>}, {pipeline_mode = #tpu.pipeline_mode<synchronous>, transform_indices = @transform_4, window_bounds = array<i64: 1, 16>}, {pipeline_mode = #tpu.pipeline_mode<synchronous>, transform_indices = @transform_5, window_bounds = array<i64: 16, 128>}, {transform_indices = @transform_6, window_bounds = array<i64: 64, 128>}]} {
    %c0 = arith.constant 0 : index
    %c0_0 = arith.constant 0 : index
    %0 = vector.load %arg1[%c0, %c0_0] : memref<64x128xi8, #tpu.memory_space<vmem>>, vector<64x128xi8>
    %1 = arith.sitofp %0 : vector<64x128xi8> to vector<64x128xbf16>
    %c0_1 = arith.constant 0 : index
    %c0_2 = arith.constant 0 : index
    %2 = vector.load %arg2[%c0_1, %c0_2] : memref<128x8xbf16, #tpu.memory_space<vmem>>, vector<128x8xbf16>
    %cst = arith.constant dense<0.000000e+00> : vector<64x8xf32>
    %3 = tpu.matmul %1, %2, %cst {dimension_numbers = #tpu.dot_dimension_numbers<[1], [0], [0], [1], [0, 0, 1, 1], [], []>} : vector<64x128xbf16>, vector<128x8xbf16>, vector<64x8xf32> -> vector<64x8xf32>
    %c0_3 = arith.constant 0 : index
    %c0_4 = arith.constant 0 : index
    %4 = vector.load %arg3[%c0_3, %c0_4] : memref<64x1xf32, #tpu.memory_space<vmem>>, vector<64x1xf32>
    %5 = vector.broadcast %4 : vector<64x1xf32> to vector<64x8xf32>
    %6 = arith.mulf %5, %3 : vector<64x8xf32>
    %c0_5 = arith.constant 0 : index
    %c0_6 = arith.constant 0 : index
    %7 = vector.load %arg4[%c0_5, %c0_6] : memref<8x16xf32, #tpu.memory_space<vmem>>, vector<8x16xf32>
    %cst_7 = arith.constant dense<0.000000e+00> : vector<64x16xf32>
    %8 = tpu.matmul %6, %7, %cst_7 {dimension_numbers = #tpu.dot_dimension_numbers<[1], [0], [0], [1], [0, 0, 1, 1], [], []>} : vector<64x8xf32>, vector<8x16xf32>, vector<64x16xf32> -> vector<64x16xf32>
    %c0_8 = arith.constant 0 : index
    %c0_9 = arith.constant 0 : index
    %9 = vector.load %arg5[%c0_8, %c0_9] : memref<1x16xf32, #tpu.memory_space<vmem>>, vector<1x16xf32>
    %10 = vector.broadcast %9 : vector<1x16xf32> to vector<64x16xf32>
    %11 = arith.addf %8, %10 : vector<64x16xf32>
    %cst_10 = arith.constant 0.000000e+00 : f32
    %12 = vector.broadcast %cst_10 : f32 to vector<64x16xf32>
    %13 = arith.maximumf %11, %12 : vector<64x16xf32>
    %c0_11 = arith.constant 0 : index
    %c0_12 = arith.constant 0 : index
    %14 = vector.load %arg3[%c0_11, %c0_12] : memref<64x1xf32, #tpu.memory_space<vmem>>, vector<64x1xf32>
    %15 = vector.broadcast %14 : vector<64x1xf32> to vector<64x16xf32>
    %16 = arith.mulf %15, %13 : vector<64x16xf32>
    %c0_13 = arith.constant 0 : index
    %c0_14 = arith.constant 0 : index
    %17 = vector.load %arg6[%c0_13, %c0_14] : memref<16x128xf32, #tpu.memory_space<vmem>>, vector<16x128xf32>
    %cst_15 = arith.constant dense<0.000000e+00> : vector<64x128xf32>
    %18 = tpu.matmul %16, %17, %cst_15 {dimension_numbers = #tpu.dot_dimension_numbers<[1], [0], [0], [1], [0, 0, 1, 1], [], []>} : vector<64x16xf32>, vector<16x128xf32>, vector<64x128xf32> -> vector<64x128xf32>
    %c0_16 = arith.constant 0 : index
    %c0_17 = arith.constant 0 : index
    %19 = vector.load %arg7[%c0_16, %c0_17] : memref<64x128xf32, #tpu.memory_space<vmem>>, vector<64x128xf32>
    tpu.vector_store %arg7[%c0_16, %c0_17], %18 {strides = array<i32>} : memref<64x128xf32, #tpu.memory_space<vmem>>, vector<64x128xf32>,
    return
  }
  func.func @transform_0(%arg0: i32) -> (i32, i32) {
    %c0_i32 = arith.constant 0 : i32
    %c0_i32_0 = arith.constant 0 : i32
    return %arg0, %c0_i32 : i32, i32
  }
  func.func @transform_1(%arg0: i32) -> (i32, i32) {
    %c0_i32 = arith.constant 0 : i32
    %c0_i32_0 = arith.constant 0 : i32
    %c0_i32_1 = arith.constant 0 : i32
    return %c0_i32, %c0_i32_0 : i32, i32
  }
  func.func @transform_2(%arg0: i32) -> (i32, i32) {
    %c0_i32 = arith.constant 0 : i32
    %c0_i32_0 = arith.constant 0 : i32
    return %arg0, %c0_i32 : i32, i32
  }
  func.func @transform_3(%arg0: i32) -> (i32, i32) {
    %c0_i32 = arith.constant 0 : i32
    %c0_i32_0 = arith.constant 0 : i32
    %c0_i32_1 = arith.constant 0 : i32
    return %c0_i32, %c0_i32_0 : i32, i32
  }
  func.func @transform_4(%arg0: i32) -> (i32, i32) {
    %c0_i32 = arith.constant 0 : i32
    %c0_i32_0 = arith.constant 0 : i32
    %c0_i32_1 = arith.constant 0 : i32
    return %c0_i32, %c0_i32_0 : i32, i32
  }
  func.func @transform_5(%arg0: i32) -> (i32, i32) {
    %c0_i32 = arith.constant 0 : i32
    %c0_i32_0 = arith.constant 0 : i32
    %c0_i32_1 = arith.constant 0 : i32
    return %c0_i32, %c0_i32_0 : i32, i32
  }
  func.func @transform_6(%arg0: i32) -> (i32, i32) {
    %c0_i32 = arith.constant 0 : i32
    %c0_i32_0 = arith.constant 0 : i32
    return %arg0, %c0_i32 : i32, i32
  }
}

</mosaic_0001>

<bundles_post_ra>
// kernel: gnn_forward.2
= control target key start
LH: loop header
LB: loop body
LE: loop exit
PB: predicated region body
PF: predicated region fallthrough
CT: control target
= control target key end

     0   :  { %s813_s21 = smov 0   ;;  %s906_s0 = inlined_call_operand.vmem [shape: s8[128,128], index: 0, kind: input, shape index: {}]   ;;  %s907_s1 = inlined_call_operand.vmem [shape: bf16[128,8], index: 1, kind: input, shape index: {}]   ;;  %s908_s2 = inlined_call_operand.vmem [shape: f32[128,1], index: 2, kind: input, shape index: {}]   ;;  %s909_s3 = inlined_call_operand.vmem [shape: f32[8,16], index: 3, kind: input, shape index: {}]   ;;  %s910_s4 = inlined_call_operand.vmem [shape: f32[1,16], index: 4, kind: input, shape index: {}]   ;;  %s911_s5 = inlined_call_operand.vmem [shape: f32[16,128], index: 5, kind: input, shape index: {}]   ;;  %s912_s6 = inlined_call_operand.vmem [shape: f32[128,128], index: 6, kind: output, shape index: {}]  }
   0x1 LB: > { %s679_s22 = sadd.s32 4294967295, %s775_s21   ;;  %p683_p0 = scmp.ge.s32.totalorder %s775_s21, 1  ;;  %s775_s21 = sphi %s813_s21, %s16_s21  }
   0x2   : > { %p224_p1 = scmp.lt.s32.totalorder %s775_s21, 3 }
   0x4   : > { %p225_p2 = pnand %p683_p0, %p224_p1 }
   0x5   : > { %s686_s25 = sshll.u32 (!%p225_p2), %s679_s22, 3  ;;  %s684_s26 = sshll.u32 (!%p225_p2), %s679_s22, 1 }
   0x6   : > { %228 = sbr.rel (%p225_p2) target bundleno = 493 (0x1ed), region = 44  ;;  %p266_p3 = scmp.lt.s32.totalorder (!%p225_p2), %s686_s25, 15 }
   0x7   : > { %p260_p4 = scmp.lt.s32.totalorder (!%p225_p2), %s684_s26, 3 }
   0xb   : > { %v747_v0 = vld [vmem:[%s907_s1 + $0x38] sm:$0xff]  ;;  %v777_v1 = vmov 0   ;;  %v746_v2 = vld [vmem:[%s907_s1 + $0x30] sm:$0xff]  ;;  %s914_s25 = smov (!%p266_p3, %s686_s25), 15  ;;  %v745_v3 = vld [vmem:[%s907_s1 + $0x28] sm:$0xff]  ;;  %s916_s26 = smov (!%p260_p4, %s684_s26), 3 }
   0xc   : > { %765 = vset.pattern.permute.xlu0 %v777_v1  ;;  %766 = vset.pattern.permute.xlu1 %v777_v1  ;;  %s687_s29 = sshll.u32 %s914_s25, 3  ;;  %v744_v6 = vld [vmem:[%s907_s1 + $0x20] sm:$0xff]  ;;  %s685_s13 = sshll.u32 %s916_s26, 3  ;;  %v743_v8 = vld [vmem:[%s907_s1 + $0x18] sm:$0xff]  ;;  %v742_v10 = vld [vmem:[%s907_s1 + $0x10] sm:$0xff]  ;;  %vm453_vm0 = vcmask 64512  }
   0xd   : > { %363 = vmatpush.bf16.msra.mxu0 %v747_v0  ;;  %748 = vmatpush.bf16.msra.mxu3 %v747_v0  ;;  %s838_s10 = scalar_lea.vmem %s908_s2, %s687_s29  ;;  %s852_s18 = scalar_lea.vmem %s906_s0, %s685_s13  ;;  %v741_v17 = vld [vmem:[%s907_s1 + $0x8] sm:$0xff]  ;;  %v740_v23 = vld [vmem:[%s907_s1] sm:$0xff]  ;;  %vm537_vm1 = vcmask 130048  }
   0xe   : > { %767 = vset.pattern.permute.xlu2 %v777_v1  ;;  %v392_v4 = vld [vmem:[%s838_s10] sm:$0xff]  ;;  %v394_v5 = vld [vmem:[%s838_s10 + $0x10] sm:$0xff]  ;;  %v393_v7 = vld [vmem:[%s838_s10 + $0x8] sm:$0xff]  ;;  %s275_s14 = scalar_lea.vmem %s912_s6, %s687_s29 }
   0xf   : > { %402 = vperm.xlu0 %765, %v392_v4   ;;  %412 = vperm.xlu1 %766, %v394_v5   ;;  %v395_v9 = vld [vmem:[%s838_s10 + $0x18] sm:$0xff]  ;;  %v277_v11 = vld [vmem:[%s852_s18] sm:$0xff]  ;;  %v398_v16 = vld [vmem:[%s838_s10 + $0x30] sm:$0xff] }
  0x10   : > { %v279_v12 = vunpack.c.0.s8 %v277_v11  ;;  %v280_v13 = vunpack.c.1.s8 %v277_v11  ;;  %v281_v14 = vunpack.c.2.s8 %v277_v11  ;;  %v282_v15 = vunpack.c.3.s8 %v277_v11  ;;  %v399_v18 = vld [vmem:[%s838_s10 + $0x38] sm:$0xff]  ;;  %v396_v26 = vld [vmem:[%s838_s10 + $0x20] sm:$0xff]  ;;  %v278_v27 = vld [vmem:[%s852_s18 + $0x8] sm:$0xff] }
  0x11   : > { %364 = vmatpush.bf16.msra.mxu0 %v746_v2  ;;  %749 = vmatpush.bf16.msra.mxu3 %v746_v2  ;;  %v283_v28 = vunpack.c.0.s8 %v278_v27  ;;  %v284_v29 = vunpack.c.1.s8 %v278_v27  ;;  %v397_v30 = vld [vmem:[%s838_s10 + $0x28] sm:$0xff]  ;;  %v285_v34 = vunpack.c.2.s8 %v278_v27  ;;  %v286_v35 = vunpack.c.3.s8 %v278_v27  ;;  %v448_v39 = vld [vmem:[%s909_s3] sm:$0xff] }
  0x12   : > { %v287_v19 = vcvt.s32.f32 %v279_v12  ;;  %v288_v20 = vcvt.s32.f32 %v280_v13  ;;  %v289_v21 = vcvt.s32.f32 %v281_v14  ;;  %v290_v22 = vcvt.s32.f32 %v282_v15  ;;  %422 = vperm.xlu2 %767, %v396_v26   ;;  %493 = vmatpush.msra.mxu1 %v448_v39  ;;  %v536_v0 = vld [vmem:[%s911_s5 + $0x8] sm:$0xff]  ;;  %v535_v1 = vld [vmem:[%s911_s5] sm:$0xff] }
  0x13   : > { %v291_v31 = vcvt.s32.f32 %v283_v28  ;;  %v292_v32 = vcvt.s32.f32 %v284_v29  ;;  %v293_v36 = vcvt.s32.f32 %v285_v34  ;;  %v294_v37 = vcvt.s32.f32 %v286_v35  ;;  %576 = vmatpush.msra.mxu2 %v536_v0  ;;  %v768_v2 = vld [vmem:[%s910_s4] ss:$0 sm:$0xff] }
  0x14   : > { %v295_v24 = vpack.c.bf16 %v288_v20, %v287_v19  ;;  %v296_v25 = vpack.c.bf16 %v290_v22, %v289_v21 }
  0x15   : > { %365 = vmatpush.bf16.msra.mxu0 %v745_v3  ;;  %750 = vmatpush.bf16.msra.mxu3 %v745_v3  ;;  %v297_v33 = vpack.c.bf16 %v292_v32, %v291_v31  ;;  %v298_v38 = vpack.c.bf16 %v294_v37, %v293_v36 }
  0x16   : > { %577 = vmatpush.msra.mxu2 %v535_v1 }
  0x17   : > { %407 = vperm.xlu0 %765, %v393_v7   ;;  %417 = vperm.xlu1 %766, %v395_v9  }
  0x19   : > { %366 = vmatpush.bf16.msra.mxu0 %v744_v6  ;;  %751 = vmatpush.bf16.msra.mxu3 %v744_v6 }
  0x1a   : > { %427 = vperm.xlu2 %767, %v397_v30  }
  0x1d   : > { %367 = vmatpush.bf16.msra.mxu0 %v743_v8  ;;  %752 = vmatpush.bf16.msra.mxu3 %v743_v8 }
  0x1f   : > { %432 = vperm.xlu0 %765, %v398_v16   ;;  %437 = vperm.xlu1 %766, %v399_v18  }
  0x21   : > { %368 = vmatpush.bf16.msra.mxu0 %v742_v10  ;;  %753 = vmatpush.bf16.msra.mxu3 %v742_v10 }
  0x25   : > { %369 = vmatpush.bf16.msra.mxu0 %v741_v17  ;;  %754 = vmatpush.bf16.msra.mxu3 %v741_v17 }
  0x29   : > { %370 = vmatpush.bf16.msra.mxu0 %v740_v23  ;;  %755 = vmatpush.bf16.msra.mxu3 %v740_v23 }
  0x2c   : > { %371 = vmatmul.bf16.vlgmr.msra.gmra.mxu0 %v295_v24  ;;  %376 = vmatmul.bf16.vlgmr.msra.gmra.mxu3 %v296_v25 }
  0x3c   : > { %381 = vmatmul.bf16.gmra.mxu3 %v297_v33 }
  0x4c   : > { %386 = vmatmul.bf16.gmra.mxu3 %v298_v38 }
  0x6c   : > { %v423_v53 = vpop.permute.xlu2 %422 }
  0x74   : > { %v428_v56 = vpop.permute.xlu2 %427 }
  0x81   : > { %v403_v40 = vpop.permute.xlu0 %402  ;;  %v413_v47 = vpop.permute.xlu1 %412 }
  0x89   : > { %v408_v44 = vpop.permute.xlu0 %407  ;;  %v418_v50 = vpop.permute.xlu1 %417 }
  0x91   : > { %v433_v59 = vpop.permute.xlu0 %432  ;;  %v438_v62 = vpop.permute.xlu1 %437 }
  0xa9   : > { %v372_v41 = vpop.f32.mrf.mxu0 }
  0xaa   : > { %v440_v42 = vmul.f32 %v403_v40, %v372_v41 }
  0xac   : > { %722 = vmatmul.msk.f32.vlgmr.msra.gmra.mxu1 %vm453_vm0, %v440_v42 }
  0xaf   : > { %v377_v43 = vpop.f32.mrf.mxu3 }
  0xb0   : > { %v442_v49 = vmul.f32 %v413_v47, %v377_v43 }
  0xb1   : > { %v374_v45 = vpop.f32.mrf.mxu0 }
  0xb2   : > { %v441_v46 = vmul.f32 %v408_v44, %v374_v45 }
  0xb4   : > { %723 = vmatmul.msk.f32.gmra.mxu1 %vm453_vm0, %v441_v46 }
  0xb7   : > { %v379_v48 = vpop.f32.mrf.mxu3 }
  0xb8   : > { %v443_v52 = vmul.f32 %v418_v50, %v379_v48 }
  0xbc   : > { %724 = vmatmul.msk.f32.gmra.mxu1 %vm453_vm0, %v442_v49 }
  0xbf   : > { %v382_v51 = vpop.f32.mrf.mxu3 }
  0xc0   : > { %v444_v54 = vmul.f32 %v423_v53, %v382_v51 }
  0xc4   : > { %725 = vmatmul.msk.f32.gmra.mxu1 %vm453_vm0, %v443_v52 }
  0xc7   : > { %v384_v55 = vpop.f32.mrf.mxu3 }
  0xc8   : > { %v445_v57 = vmul.f32 %v428_v56, %v384_v55 }
  0xcc   : > { %726 = vmatmul.msk.f32.gmra.mxu1 %vm453_vm0, %v444_v54 }
  0xcf   : > { %v387_v58 = vpop.f32.mrf.mxu3 }
  0xd0   : > { %v446_v60 = vmul.f32 %v433_v59, %v387_v58 }
  0xd4   : > { %727 = vmatmul.msk.f32.gmra.mxu1 %vm453_vm0, %v445_v57 }
  0xd7   : > { %v389_v61 = vpop.f32.mrf.mxu3 }
  0xd8   : > { %v447_v63 = vmul.f32 %v438_v62, %v389_v61 }
  0xdc   : > { %728 = vmatmul.msk.f32.gmra.mxu1 %vm453_vm0, %v446_v60 }
  0xe4   : > { %729 = vmatmul.msk.f32.gmra.mxu1 %vm453_vm0, %v447_v63 }
 0x129   : > { %v495_v3 = vpop.f32.mrf.mxu1 }
 0x12a   : > { %v496_v4 = vadd.f32 %v768_v2, %v495_v3 }
 0x12c   : > { %v519_v5 = vmax.f32 %v496_v4, 0.0 }
 0x12e   : > { %v527_v6 = vmul.f32 %v519_v5, %v403_v40 }
 0x130   : > { %730 = vmatmul.msk.f32.vlgmr.msra.gmra.mxu2 %vm537_vm1, %v527_v6 }
 0x131   : > { %v498_v7 = vpop.f32.mrf.mxu1 }
 0x132   : > { %v499_v8 = vadd.f32 %v768_v2, %v498_v7 }
 0x134   : > { %v520_v9 = vmax.f32 %v499_v8, 0.0 }
 0x136   : > { %v528_v10 = vmul.f32 %v520_v9, %v408_v44 }
 0x138   : > { %731 = vmatmul.msk.f32.gmra.mxu2 %vm537_vm1, %v528_v10 }
 0x139   : > { %v501_v11 = vpop.f32.mrf.mxu1 }
 0x13a   : > { %v502_v12 = vadd.f32 %v768_v2, %v501_v11 }
 0x13c   : > { %v521_v13 = vmax.f32 %v502_v12, 0.0 }
 0x13e   : > { %v529_v14 = vmul.f32 %v521_v13, %v413_v47 }
 0x140   : > { %732 = vmatmul.msk.f32.gmra.mxu2 %vm537_vm1, %v529_v14 }
 0x141   : > { %v504_v15 = vpop.f32.mrf.mxu1 }
 0x142   : > { %v505_v16 = vadd.f32 %v768_v2, %v504_v15 }
 0x144   : > { %v522_v17 = vmax.f32 %v505_v16, 0.0 }
 0x146   : > { %v530_v18 = vmul.f32 %v522_v17, %v418_v50 }
 0x148   : > { %733 = vmatmul.msk.f32.gmra.mxu2 %vm537_vm1, %v530_v18 }
 0x149   : > { %v507_v19 = vpop.f32.mrf.mxu1 }
 0x14a   : > { %v508_v20 = vadd.f32 %v768_v2, %v507_v19 }
 0x14c   : > { %v523_v21 = vmax.f32 %v508_v20, 0.0 }
 0x14e   : > { %v531_v22 = vmul.f32 %v523_v21, %v423_v53 }
 0x150   : > { %734 = vmatmul.msk.f32.gmra.mxu2 %vm537_vm1, %v531_v22 }
 0x151   : > { %v510_v23 = vpop.f32.mrf.mxu1 }
 0x152   : > { %v511_v24 = vadd.f32 %v768_v2, %v510_v23 }
 0x154   : > { %v524_v25 = vmax.f32 %v511_v24, 0.0 }
 0x156   : > { %v532_v26 = vmul.f32 %v524_v25, %v428_v56 }
 0x158   : > { %735 = vmatmul.msk.f32.gmra.mxu2 %vm537_vm1, %v532_v26 }
 0x159   : > { %v513_v27 = vpop.f32.mrf.mxu1 }
 0x15a   : > { %v514_v28 = vadd.f32 %v768_v2, %v513_v27 }
 0x15c   : > { %v525_v29 = vmax.f32 %v514_v28, 0.0 }
 0x15e   : > { %v533_v30 = vmul.f32 %v525_v29, %v433_v59 }
 0x160   : > { %736 = vmatmul.msk.f32.gmra.mxu2 %vm537_vm1, %v533_v30 }
 0x161   : > { %v516_v31 = vpop.f32.mrf.mxu1 }
 0x162   : > { %v517_v32 = vadd.f32 %v768_v2, %v516_v31 }
 0x164   : > { %v526_v33 = vmax.f32 %v517_v32, 0.0 }
 0x166   : > { %v534_v34 = vmul.f32 %v526_v33, %v438_v62 }
 0x168   : > { %737 = vmatmul.msk.f32.gmra.mxu2 %vm537_vm1, %v534_v34 }
 0x1b3   : > { %v579_v35 = vpop.f32.mrf.mxu2 }
 0x1b4   : > { %603 = vst [vmem:[%s275_s14] sm:$0xff] %v579_v35 }
 0x1bb   : > { %v582_v36 = vpop.f32.mrf.mxu2 }
 0x1bc   : > { %604 = vst [vmem:[%s275_s14 + $0x8] sm:$0xff] %v582_v36 }
 0x1c3   : > { %v585_v37 = vpop.f32.mrf.mxu2 }
 0x1c4   : > { %605 = vst [vmem:[%s275_s14 + $0x10] sm:$0xff] %v585_v37 }
 0x1cb   : > { %v588_v38 = vpop.f32.mrf.mxu2 }
 0x1cc   : > { %606 = vst [vmem:[%s275_s14 + $0x18] sm:$0xff] %v588_v38 }
 0x1d3   : > { %v591_v39 = vpop.f32.mrf.mxu2 }
 0x1d4   : > { %607 = vst [vmem:[%s275_s14 + $0x20] sm:$0xff] %v591_v39 }
 0x1db   : > { %v594_v40 = vpop.f32.mrf.mxu2 }
 0x1dc   : > { %608 = vst [vmem:[%s275_s14 + $0x28] sm:$0xff] %v594_v40 }
 0x1e3   : > { %v597_v41 = vpop.f32.mrf.mxu2 }
 0x1e4   : > { %609 = vst [vmem:[%s275_s14 + $0x30] sm:$0xff] %v597_v41 }
 0x1eb   : > { %v600_v42 = vpop.f32.mrf.mxu2 }
 0x1ec   : > { %610 = vst [vmem:[%s275_s14 + $0x38] sm:$0xff] %v600_v42 }
 0x1ed PF: > { %s16_s21 = sadd.s32 1, %s775_s21  }
 0x1ee   : > { %p13_p5 = scmp.ge.s32.totalorder %s16_s21, 4  }
 0x1f0   :  { %15 = sbr.rel (!%p13_p5) target bundleno = 1 (0x1), region = 77 }

// kernel: gnn_forward.3
= control target key start
LH: loop header
LB: loop body
LE: loop exit
PB: predicated region body
PF: predicated region fallthrough
CT: control target
= control target key end

     0   :  { %s643_s15 = smov 0   ;;  %s772_s0 = inlined_call_operand.vmem [shape: s8[128,128], index: 0, kind: input, shape index: {}]   ;;  %s773_s1 = inlined_call_operand.vmem [shape: f32[128,128], index: 1, kind: input, shape index: {}]   ;;  %s774_s2 = inlined_call_operand.vmem [shape: f32[128,1], index: 2, kind: input, shape index: {}]   ;;  %s775_s3 = inlined_call_operand.vmem [shape: f32[1,128], index: 3, kind: input, shape index: {}]   ;;  %s776_s4 = inlined_call_operand.vmem [shape: f32[128,128], index: 4, kind: output, shape index: {}]  }
   0x1 LB: > { %s567_s16 = sadd.s32 4294967295, %s615_s15   ;;  %p571_p0 = scmp.ge.s32.totalorder %s615_s15, 1  ;;  %s615_s15 = sphi %s643_s15, %s14_s15  }
   0x2   : > { %p174_p1 = scmp.lt.s32.totalorder %s615_s15, 3 }
   0x4   : > { %p175_p2 = pnand %p571_p0, %p174_p1 }
   0x5   : > { %s680_s9 = sshll.u32 (!%p175_p2), %s567_s16, 1  ;;  %s684_s10 = sshll.u32 (!%p175_p2), %s567_s16, 3 }
   0x6   : > { %178 = sbr.rel (%p175_p2) target bundleno = 214 (0xd6), region = 36  ;;  %p206_p3 = scmp.lt.s32.totalorder (!%p175_p2), %s680_s9, 3 }
   0x7   : > { %p212_p4 = scmp.lt.s32.totalorder (!%p175_p2), %s684_s10, 15 }
   0xb   : > { %v259_v0 = vld [vmem:[%s773_s1 + $0x70] sm:$0xff]  ;;  %v260_v1 = vld [vmem:[%s773_s1 + $0x78] sm:$0xff]  ;;  %v257_v2 = vld [vmem:[%s773_s1 + $0x60] sm:$0xff]  ;;  %s778_s9 = smov (!%p206_p3, %s680_s9), 3  ;;  %s780_s10 = smov (!%p212_p4, %s684_s10), 15 }
   0xc   : > { %v275_v3 = vpack.c.bf16 %v259_v0, %v259_v0  ;;  %v276_v4 = vpack.c.bf16 %v260_v1, %v260_v1  ;;  %v258_v5 = vld [vmem:[%s773_s1 + $0x68] sm:$0xff]  ;;  %v273_v6 = vpack.c.bf16 %v257_v2, %v257_v2  ;;  %v255_v7 = vld [vmem:[%s773_s1 + $0x50] sm:$0xff]  ;;  %v256_v8 = vld [vmem:[%s773_s1 + $0x58] sm:$0xff]  ;;  %s573_s22 = sshll.u32 %s778_s9, 3  ;;  %s575_s23 = sshll.u32 %s780_s10, 3 }
   0xd   : > { %v274_v9 = vpack.c.bf16 %v258_v5, %v258_v5  ;;  %v271_v10 = vpack.c.bf16 %v255_v7, %v255_v7  ;;  %v272_v11 = vpack.c.bf16 %v256_v8, %v256_v8  ;;  %v253_v20 = vld [vmem:[%s773_s1 + $0x40] sm:$0xff]  ;;  %v254_v25 = vld [vmem:[%s773_s1 + $0x48] sm:$0xff]  ;;  %v251_v26 = vld [vmem:[%s773_s1 + $0x30] sm:$0xff]  ;;  %s209_s30 = scalar_lea.vmem %s772_s0, %s573_s22  ;;  %s729_s7 = scalar_lea.vmem %s774_s2, %s575_s23 }
   0xe   : > { %v376_v12 = vunpack.c.l.b16 %v275_v3  ;;  %v377_v13 = vunpack.c.l.b16 %v276_v4  ;;  %v291_v14 = vunpack.c.l.bf16 %v275_v3  ;;  %v292_v15 = vunpack.c.l.bf16 %v276_v4  ;;  %v252_v35 = vld [vmem:[%s773_s1 + $0x38] sm:$0xff]  ;;  %v249_v42 = vld [vmem:[%s773_s1 + $0x20] sm:$0xff]  ;;  %v250_v45 = vld [vmem:[%s773_s1 + $0x28] sm:$0xff]  ;;  %s759_s13 = scalar_lea.vmem %s776_s4, %s575_s23 }
   0xf   : > { %v374_v16 = vunpack.c.l.b16 %v273_v6  ;;  %v375_v17 = vunpack.c.l.b16 %v274_v9  ;;  %v289_v18 = vunpack.c.l.bf16 %v273_v6  ;;  %v290_v19 = vunpack.c.l.bf16 %v274_v9  ;;  %v247_v56 = vld [vmem:[%s773_s1 + $0x10] sm:$0xff]  ;;  %v248_v57 = vld [vmem:[%s773_s1 + $0x18] sm:$0xff]  ;;  %v245_v4 = vld [vmem:[%s773_s1] sm:$0xff] }
  0x10   : > { %v385_v21 = vpack.c.b16 %v377_v13, %v376_v12  ;;  %v307_v22 = vsub.f32 %v259_v0, %v291_v14  ;;  %v308_v23 = vsub.f32 %v260_v1, %v292_v15  ;;  %v372_v24 = vunpack.c.l.b16 %v271_v10 }
  0x11   : > { %v384_v27 = vpack.c.b16 %v375_v17, %v374_v16  ;;  %v305_v28 = vsub.f32 %v257_v2, %v289_v18  ;;  %v306_v29 = vsub.f32 %v258_v5, %v290_v19  ;;  %v373_v30 = vunpack.c.l.b16 %v272_v11  ;;  %v246_v5 = vld [vmem:[%s773_s1 + $0x8] sm:$0xff]  ;;  %v731_v16 = vld [vmem:[%s209_s30] sm:$0xff] }
  0x12   : > { %394 = vmatpush.bf16.msra.mxu1 %v385_v21  ;;  %588 = vmatpush.bf16.msra.mxu3 %v385_v21  ;;  %v316_v31 = vpack.c.bf16 %v308_v23, %v307_v22  ;;  %v287_v32 = vunpack.c.l.bf16 %v271_v10  ;;  %v288_v33 = vunpack.c.l.bf16 %v272_v11  ;;  %v269_v34 = vpack.c.bf16 %v253_v20, %v253_v20  ;;  %v425_v21 = vld [vmem:[%s729_s7 + $0x10] sm:$0xff]  ;;  %v423_v22 = vld [vmem:[%s729_s7] sm:$0xff] }
  0x13   : > { %v270_v36 = vpack.c.bf16 %v254_v25, %v254_v25  ;;  %v267_v37 = vpack.c.bf16 %v251_v26, %v251_v26  ;;  %v315_v38 = vpack.c.bf16 %v306_v29, %v305_v28  ;;  %v268_v44 = vpack.c.bf16 %v252_v35, %v252_v35 }
  0x14   : > { %317 = vmatpush.bf16.msra.mxu0 %v316_v31  ;;  %580 = vmatpush.bf16.msra.mxu2 %v316_v31  ;;  %v303_v39 = vsub.f32 %v255_v7, %v287_v32  ;;  %v304_v40 = vsub.f32 %v256_v8, %v288_v33  ;;  %v285_v41 = vunpack.c.l.bf16 %v269_v34  ;;  %v383_v46 = vpack.c.b16 %v373_v30, %v372_v24 }
  0x15   : > { %v286_v43 = vunpack.c.l.bf16 %v270_v36  ;;  %v370_v47 = vunpack.c.l.b16 %v269_v34  ;;  %v371_v48 = vunpack.c.l.b16 %v270_v36  ;;  %v283_v50 = vunpack.c.l.bf16 %v267_v37  ;;  %v427_v36 = vld [vmem:[%s729_s7 + $0x20] sm:$0xff] }
  0x16   : > { %395 = vmatpush.bf16.msra.mxu1 %v384_v27  ;;  %589 = vmatpush.bf16.msra.mxu3 %v384_v27  ;;  %v314_v49 = vpack.c.bf16 %v304_v40, %v303_v39  ;;  %v284_v51 = vunpack.c.l.bf16 %v268_v44  ;;  %v265_v52 = vpack.c.bf16 %v249_v42, %v249_v42  ;;  %v301_v53 = vsub.f32 %v253_v20, %v285_v41  ;;  %v733_v20 = vld [vmem:[%s209_s30 + $0x8] sm:$0xff] }
  0x17   : > { %v302_v54 = vsub.f32 %v254_v25, %v286_v43  ;;  %v266_v55 = vpack.c.bf16 %v250_v45, %v250_v45  ;;  %v382_v58 = vpack.c.b16 %v371_v48, %v370_v47  ;;  %v368_v59 = vunpack.c.l.b16 %v267_v37 }
  0x18   : > { %318 = vmatpush.bf16.msra.mxu0 %v315_v38  ;;  %581 = vmatpush.bf16.msra.mxu2 %v315_v38  ;;  %v369_v60 = vunpack.c.l.b16 %v268_v44  ;;  %v299_v61 = vsub.f32 %v251_v26, %v283_v50  ;;  %v300_v62 = vsub.f32 %v252_v35, %v284_v51  ;;  %v281_v63 = vunpack.c.l.bf16 %v265_v52  ;;  %v428_v50 = vld [vmem:[%s729_s7 + $0x28] sm:$0xff]  ;;  %v430_v51 = vld [vmem:[%s729_s7 + $0x38] sm:$0xff] }
  0x19   : > { %v263_v0 = vpack.c.bf16 %v247_v56, %v247_v56  ;;  %v313_v1 = vpack.c.bf16 %v302_v54, %v301_v53  ;;  %v282_v2 = vunpack.c.l.bf16 %v266_v55  ;;  %v264_v3 = vpack.c.bf16 %v248_v57, %v248_v57 }
  0x1a   : > { %396 = vmatpush.bf16.msra.mxu1 %v383_v46  ;;  %590 = vmatpush.bf16.msra.mxu3 %v383_v46  ;;  %v381_v6 = vpack.c.b16 %v369_v60, %v368_v59  ;;  %v366_v7 = vunpack.c.l.b16 %v265_v52  ;;  %v367_v8 = vunpack.c.l.b16 %v266_v55  ;;  %v312_v9 = vpack.c.bf16 %v300_v62, %v299_v61  ;;  %v424_v46 = vld [vmem:[%s729_s7 + $0x8] sm:$0xff]  ;;  %v429_v52 = vld [vmem:[%s729_s7 + $0x30] sm:$0xff] }
  0x1b   : > { %v297_v10 = vsub.f32 %v249_v42, %v281_v63  ;;  %v279_v11 = vunpack.c.l.bf16 %v263_v0  ;;  %v298_v12 = vsub.f32 %v250_v45, %v282_v2  ;;  %v280_v13 = vunpack.c.l.bf16 %v264_v3  ;;  %v426_v45 = vld [vmem:[%s729_s7 + $0x18] sm:$0xff] }
  0x1c   : > { %319 = vmatpush.bf16.msra.mxu0 %v314_v49  ;;  %582 = vmatpush.bf16.msra.mxu2 %v314_v49  ;;  %v261_v14 = vpack.c.bf16 %v245_v4, %v245_v4  ;;  %v262_v15 = vpack.c.bf16 %v246_v5, %v246_v5  ;;  %v380_v17 = vpack.c.b16 %v367_v8, %v366_v7  ;;  %v364_v18 = vunpack.c.l.b16 %v263_v0 }
  0x1d   : > { %v365_v19 = vunpack.c.l.b16 %v264_v3  ;;  %v295_v23 = vsub.f32 %v247_v56, %v279_v11  ;;  %v617_v24 = vmov 0   ;;  %v311_v25 = vpack.c.bf16 %v298_v12, %v297_v10  ;;  %v608_v3 = vld [vmem:[%s775_s3] ss:$0 sm:$0xff] }
  0x1e   : > { %397 = vmatpush.bf16.msra.mxu1 %v382_v58  ;;  %591 = vmatpush.bf16.msra.mxu3 %v382_v58  ;;  %v296_v26 = vsub.f32 %v248_v57, %v280_v13  ;;  %v277_v27 = vunpack.c.l.bf16 %v261_v14  ;;  %v278_v28 = vunpack.c.l.bf16 %v262_v15  ;;  %v225_v29 = vunpack.c.0.s8 %v731_v16 }
  0x1f   : > { %606 = vset.pattern.permute.xlu1 %v617_v24  ;;  %605 = vset.pattern.permute.xlu0 %v617_v24  ;;  %v226_v30 = vunpack.c.1.s8 %v731_v16  ;;  %v229_v31 = vunpack.c.0.s8 %v733_v20  ;;  %v230_v32 = vunpack.c.1.s8 %v733_v20  ;;  %v379_v33 = vpack.c.b16 %v365_v19, %v364_v18 }
  0x20   : > { %320 = vmatpush.bf16.msra.mxu0 %v313_v1  ;;  %583 = vmatpush.bf16.msra.mxu2 %v313_v1  ;;  %v362_v34 = vunpack.c.l.b16 %v261_v14  ;;  %v363_v35 = vunpack.c.l.b16 %v262_v15  ;;  %v310_v37 = vpack.c.bf16 %v296_v26, %v295_v23  ;;  %v293_v38 = vsub.f32 %v245_v4, %v277_v27 }
  0x21   : > { %443 = vperm.xlu1 %606, %v425_v21   ;;  %433 = vperm.xlu0 %605, %v423_v22   ;;  %v294_v39 = vsub.f32 %v246_v5, %v278_v28  ;;  %v233_v40 = vcvt.s32.f32 %v225_v29  ;;  %v234_v41 = vcvt.s32.f32 %v226_v30  ;;  %v237_v42 = vcvt.s32.f32 %v229_v31 }
  0x22   : > { %398 = vmatpush.bf16.msra.mxu1 %v381_v6  ;;  %592 = vmatpush.bf16.msra.mxu3 %v381_v6  ;;  %v238_v43 = vcvt.s32.f32 %v230_v32  ;;  %v378_v44 = vpack.c.b16 %v363_v35, %v362_v34  ;;  %v227_v53 = vunpack.c.2.s8 %v731_v16  ;;  %v228_v54 = vunpack.c.3.s8 %v731_v16 }
  0x23   : > { %607 = vset.pattern.permute.xlu2 %v617_v24  ;;  %v309_v47 = vpack.c.bf16 %v294_v39, %v293_v38  ;;  %v241_v48 = vpack.c.bf16 %v234_v41, %v233_v40  ;;  %v231_v55 = vunpack.c.2.s8 %v733_v20  ;;  %v232_v56 = vunpack.c.3.s8 %v733_v20 }
  0x24   : > { %321 = vmatpush.bf16.msra.mxu0 %v312_v9  ;;  %584 = vmatpush.bf16.msra.mxu2 %v312_v9  ;;  %v243_v49 = vpack.c.bf16 %v238_v43, %v237_v42  ;;  %v235_v57 = vcvt.s32.f32 %v227_v53  ;;  %v236_v58 = vcvt.s32.f32 %v228_v54 }
  0x25   : > { %453 = vperm.xlu2 %607, %v427_v36   ;;  %v239_v59 = vcvt.s32.f32 %v231_v55  ;;  %v240_v60 = vcvt.s32.f32 %v232_v56 }
  0x26   : > { %399 = vmatpush.bf16.msra.mxu1 %v380_v17  ;;  %593 = vmatpush.bf16.msra.mxu3 %v380_v17  ;;  %v242_v61 = vpack.c.bf16 %v236_v58, %v235_v57 }
  0x27   : > { %v244_v62 = vpack.c.bf16 %v240_v60, %v239_v59 }
  0x28   : > { %322 = vmatpush.bf16.msra.mxu0 %v311_v25  ;;  %585 = vmatpush.bf16.msra.mxu2 %v311_v25 }
  0x29   : > { %448 = vperm.xlu1 %606, %v426_v45   ;;  %438 = vperm.xlu0 %605, %v424_v46  }
  0x2a   : > { %400 = vmatpush.bf16.msra.mxu1 %v379_v33  ;;  %594 = vmatpush.bf16.msra.mxu3 %v379_v33 }
  0x2c   : > { %323 = vmatpush.bf16.msra.mxu0 %v310_v37  ;;  %586 = vmatpush.bf16.msra.mxu2 %v310_v37 }
  0x2d   : > { %458 = vperm.xlu2 %607, %v428_v50  }
  0x2e   : > { %401 = vmatpush.bf16.msra.mxu1 %v378_v44  ;;  %595 = vmatpush.bf16.msra.mxu3 %v378_v44 }
  0x30   : > { %324 = vmatpush.bf16.msra.mxu0 %v309_v47  ;;  %587 = vmatpush.bf16.msra.mxu2 %v309_v47 }
  0x31   : > { %402 = vmatmul.bf16.vlgmr.msra.gmra.mxu1 %v241_v48  ;;  %412 = vmatmul.bf16.vlgmr.msra.gmra.mxu3 %v243_v49 }
  0x32   : > { %468 = vperm.xlu1 %606, %v430_v51   ;;  %463 = vperm.xlu0 %605, %v429_v52  }
  0x33   : > { %325 = vmatmul.bf16.vlgmr.msra.gmra.mxu0 %v241_v48  ;;  %335 = vmatmul.bf16.vlgmr.msra.gmra.mxu2 %v243_v49 }
  0x41   : > { %407 = vmatmul.bf16.gmra.mxu1 %v242_v61  ;;  %417 = vmatmul.bf16.gmra.mxu3 %v244_v62 }
  0x43   : > { %330 = vmatmul.bf16.gmra.mxu0 %v242_v61  ;;  %340 = vmatmul.bf16.gmra.mxu2 %v244_v62 }
  0x7f   : > { %v454_v5 = vpop.permute.xlu2 %453 }
  0x87   : > { %v459_v20 = vpop.permute.xlu2 %458 }
  0x93   : > { %v434_v0 = vpop.permute.xlu0 %433  ;;  %v444_v17 = vpop.permute.xlu1 %443 }
  0x9b   : > { %v439_v14 = vpop.permute.xlu0 %438  ;;  %v449_v31 = vpop.permute.xlu1 %448 }
  0xa4   : > { %v464_v33 = vpop.permute.xlu0 %463  ;;  %v469_v45 = vpop.permute.xlu1 %468 }
  0xae   : > { %v403_v63 = vpop.f32.mrf.mxu1 }
  0xb0   : > { %v326_v1 = vpop.f32.mrf.mxu0 }
  0xb1   : > { %v404_v2 = vadd.f32 %v403_v63, %v326_v1 }
  0xb3   : > { %v471_v4 = vmul.f32 %v434_v0, %v404_v2 }
  0xb4   : > { %v413_v6 = vpop.f32.mrf.mxu3 }
  0xb5   : > { %v483_v7 = vadd.f32 %v608_v3, %v471_v4 }
  0xb6   : > { %v336_v8 = vpop.f32.mrf.mxu2  ;;  %v405_v9 = vpop.f32.mrf.mxu1 }
  0xb7   : > { %491 = vst [vmem:[%s759_s13] sm:$0xff] %v483_v7  ;;  %v414_v10 = vadd.f32 %v413_v6, %v336_v8 }
  0xb8   : > { %v328_v11 = vpop.f32.mrf.mxu0 }
  0xb9   : > { %v475_v12 = vmul.f32 %v454_v5, %v414_v10  ;;  %v406_v13 = vadd.f32 %v405_v9, %v328_v11 }
  0xbb   : > { %v487_v15 = vadd.f32 %v608_v3, %v475_v12  ;;  %v472_v16 = vmul.f32 %v439_v14, %v406_v13 }
  0xbc   : > { %v415_v18 = vpop.f32.mrf.mxu3 }
  0xbd   : > { %495 = vst [vmem:[%s759_s13 + $0x20] sm:$0xff] %v487_v15  ;;  %v484_v19 = vadd.f32 %v608_v3, %v472_v16 }
  0xbe   : > { %v338_v21 = vpop.f32.mrf.mxu2  ;;  %v408_v22 = vpop.f32.mrf.mxu1 }
  0xbf   : > { %492 = vst [vmem:[%s759_s13 + $0x8] sm:$0xff] %v484_v19  ;;  %v416_v23 = vadd.f32 %v415_v18, %v338_v21 }
  0xc0   : > { %v331_v24 = vpop.f32.mrf.mxu0 }
  0xc1   : > { %v476_v25 = vmul.f32 %v459_v20, %v416_v23  ;;  %v409_v26 = vadd.f32 %v408_v22, %v331_v24 }
  0xc3   : > { %v488_v27 = vadd.f32 %v608_v3, %v476_v25  ;;  %v473_v28 = vmul.f32 %v444_v17, %v409_v26 }
  0xc4   : > { %v418_v29 = vpop.f32.mrf.mxu3 }
  0xc5   : > { %496 = vst [vmem:[%s759_s13 + $0x28] sm:$0xff] %v488_v27  ;;  %v485_v30 = vadd.f32 %v608_v3, %v473_v28 }
  0xc6   : > { %v341_v32 = vpop.f32.mrf.mxu2  ;;  %v410_v35 = vpop.f32.mrf.mxu1 }
  0xc7   : > { %493 = vst [vmem:[%s759_s13 + $0x10] sm:$0xff] %v485_v30  ;;  %v419_v34 = vadd.f32 %v418_v29, %v341_v32 }
  0xc8   : > { %v333_v36 = vpop.f32.mrf.mxu0 }
  0xc9   : > { %v477_v37 = vmul.f32 %v464_v33, %v419_v34  ;;  %v411_v38 = vadd.f32 %v410_v35, %v333_v36 }
  0xcb   : > { %v489_v39 = vadd.f32 %v608_v3, %v477_v37  ;;  %v474_v40 = vmul.f32 %v449_v31, %v411_v38 }
  0xcc   : > { %v420_v42 = vpop.f32.mrf.mxu3 }
  0xcd   : > { %497 = vst [vmem:[%s759_s13 + $0x30] sm:$0xff] %v489_v39  ;;  %v486_v41 = vadd.f32 %v608_v3, %v474_v40 }
  0xce   : > { %v343_v43 = vpop.f32.mrf.mxu2 }
  0xcf   : > { %494 = vst [vmem:[%s759_s13 + $0x18] sm:$0xff] %v486_v41  ;;  %v421_v44 = vadd.f32 %v420_v42, %v343_v43 }
  0xd1   : > { %v478_v46 = vmul.f32 %v469_v45, %v421_v44 }
  0xd3   : > { %v490_v47 = vadd.f32 %v608_v3, %v478_v46 }
  0xd5   : > { %498 = vst [vmem:[%s759_s13 + $0x38] sm:$0xff] %v490_v47 }
  0xd6 PF: > { %s14_s15 = sadd.s32 1, %s615_s15  }
  0xd7   : > { %p11_p5 = scmp.ge.s32.totalorder %s14_s15, 4  }
  0xd9   :  { %13 = sbr.rel (!%p11_p5) target bundleno = 1 (0x1), region = 69 }

</bundles_post_ra>
